<compile_context>
chip_gen: v6e
topology: v6e:2x2x1
jax: 0.10.0
libtpu: 0.0.40
codegen_flags: <defaults>
</compile_context>

<pallas_src>
import math
import jax
import jax.numpy as jnp
from jax import lax
from jax.experimental import pallas as pl
from jax.experimental.pallas import tpu as pltpu


def _round_up(x: int, m: int) -> int:
    return ((x + m - 1) // m) * m


# ---------------------------------------------------------------------------
# Kernels
# ---------------------------------------------------------------------------

def _noisy_linear_kernel_fused(x_ref, wmu_ref, wsig_ref, eo_ref, ei_ref,
                               bmu_ref, bsig_ref, beps_ref, o_ref):
    """Single-K-block path: no accumulator scratch, one fused matmul + bias."""
    # Effective weight tile: W = W_mu + W_sigma * outer(eps_out, eps_in)
    w = wmu_ref[...] + wsig_ref[...] * (eo_ref[...] * ei_ref[...])
    # Effective bias tile: (1, tn), broadcasts over rows.
    b = bmu_ref[...] + bsig_ref[...] * beps_ref[...]
    acc = lax.dot_general(
        x_ref[...], w,
        dimension_numbers=(((1,), (1,)), ((), ())),
        preferred_element_type=jnp.float32)
    o_ref[...] = (acc + b).astype(o_ref.dtype)


def _noisy_linear_kernel_acc(x_ref, wmu_ref, wsig_ref, eo_ref, ei_ref,
                             bmu_ref, bsig_ref, beps_ref, o_ref, acc_ref):
    """Tiled-K path: f32 VMEM accumulator, init at k==0, finalize at k==last."""
    k = pl.program_id(2)

    @pl.when(k == 0)
    def _():
        acc_ref[...] = jnp.zeros_like(acc_ref)

    # Reconstruct the weight-noise tile from factorized noise:
    #   weps[o, i] = eps_out[o] * eps_in[i]          (tn,1)*(1,tk) -> (tn,tk)
    w = wmu_ref[...] + wsig_ref[...] * (eo_ref[...] * ei_ref[...])

    # acc += x_tile @ W_tile^T -- contract on the shared `in` dim without
    # materializing a transpose; f32 accumulation on the MXU.
    acc_ref[...] += lax.dot_general(
        x_ref[...], w,
        dimension_numbers=(((1,), (1,)), ((), ())),
        preferred_element_type=jnp.float32)

    @pl.when(k == pl.num_programs(2) - 1)
    def _():
        b = bmu_ref[...] + bsig_ref[...] * beps_ref[...]
        o_ref[...] = (acc_ref[...] + b).astype(o_ref.dtype)


# ---------------------------------------------------------------------------
# Wrapper
# ---------------------------------------------------------------------------

def _dim_plan(size: int, max_tile: int, align: int):
    """Pick (tile, padded_size) for one dim.

    If the dim fits in the tile budget, use the full dim as a single block
    (allowed even when unaligned) and skip padding entirely.  Otherwise pad
    to the minimal `align`-multiple and pick the largest aligned tile that
    divides it (<= max_tile).
    """
    if size <= max_tile:
        return size, size
    padded = _round_up(size, align)
    tile = (max_tile // align) * align
    while padded % tile != 0:
        tile -= align
    return tile, padded


def noisy_linear(x, weight_mu, weight_sigma, bias_mu, bias_sigma,
                 bias_epsilon, eps_in, eps_out, *,
                 tm_max=256, tn_max=256, tk_max=512):
    """y = x @ (W_mu + W_sig * outer(eps_out, eps_in)).T + (b_mu + b_sig * b_eps)."""
    batch, in_features = x.shape
    out_features, _ = weight_mu.shape

    tm, M = _dim_plan(batch, tm_max, 8)
    tn, N = _dim_plan(out_features, tn_max, 128)
    tk, K = _dim_plan(in_features, tk_max, 128)

    f32 = jnp.float32

    def pad2(a, rows, cols, dtype):
        a = a.astype(dtype)
        if a.shape == (rows, cols):
            return a
        # Zero padding is exact: padded K columns contribute 0 to the dot,
        # padded N columns are sliced off below.
        return jnp.zeros((rows, cols), dtype).at[:a.shape[0], :a.shape[1]].set(a)

    xp = pad2(x, M, K, x.dtype)
    wmu = pad2(weight_mu, N, K, f32)
    wsig = pad2(weight_sigma, N, K, f32)
    eo = pad2(eps_out.reshape(-1, 1), N, 1, f32)
    ei = pad2(eps_in.reshape(1, -1), 1, K, f32)
    bmu = pad2(bias_mu.reshape(1, -1), 1, N, f32)
    bsig = pad2(bias_sigma.reshape(1, -1), 1, N, f32)
    beps = pad2(bias_epsilon.reshape(1, -1), 1, N, f32)

    gm, gn, gk = M // tm, N // tn, K // tk

    if gk == 1:
        # Fast path: no reduction grid, no accumulator scratch.
        grid = (gm, gn)
        in_specs = [
            pl.BlockSpec((tm, tk), lambda i, j: (i, 0)),   # x
            pl.BlockSpec((tn, tk), lambda i, j: (j, 0)),   # weight_mu
            pl.BlockSpec((tn, tk), lambda i, j: (j, 0)),   # weight_sigma
            pl.BlockSpec((tn, 1), lambda i, j: (j, 0)),    # eps_out (col)
            pl.BlockSpec((1, tk), lambda i, j: (0, 0)),    # eps_in (row)
            pl.BlockSpec((1, tn), lambda i, j: (0, j)),    # bias_mu
            pl.BlockSpec((1, tn), lambda i, j: (0, j)),    # bias_sigma
            pl.BlockSpec((1, tn), lambda i, j: (0, j)),    # bias_epsilon
        ]
        out_spec = pl.BlockSpec((tm, tn), lambda i, j: (i, j))
        kernel = _noisy_linear_kernel_fused
        scratch = []
        dims = ("parallel", "parallel")
    else:
        grid = (gm, gn, gk)
        in_specs = [
            pl.BlockSpec((tm, tk), lambda i, j, k: (i, k)),   # x
            pl.BlockSpec((tn, tk), lambda i, j, k: (j, k)),   # weight_mu
            pl.BlockSpec((tn, tk), lambda i, j, k: (j, k)),   # weight_sigma
            pl.BlockSpec((tn, 1), lambda i, j, k: (j, 0)),    # eps_out (col)
            pl.BlockSpec((1, tk), lambda i, j, k: (0, k)),    # eps_in (row)
            pl.BlockSpec((1, tn), lambda i, j, k: (0, j)),    # bias_mu
            pl.BlockSpec((1, tn), lambda i, j, k: (0, j)),    # bias_sigma
            pl.BlockSpec((1, tn), lambda i, j, k: (0, j)),    # bias_epsilon
        ]
        out_spec = pl.BlockSpec((tm, tn), lambda i, j, k: (i, j))
        kernel = _noisy_linear_kernel_acc
        scratch = [pltpu.VMEM((tm, tn), jnp.float32)]
        dims = ("parallel", "parallel", "arbitrary")

    out = pl.pallas_call(
        kernel,
        out_shape=jax.ShapeDtypeStruct((M, N), x.dtype),
        grid_spec=pltpu.PrefetchScalarGridSpec(
            num_scalar_prefetch=0,
            grid=grid,
            in_specs=in_specs,
            out_specs=out_spec,
            scratch_shapes=scratch,
        ),
        compiler_params=pltpu.CompilerParams(dimension_semantics=dims),
    )(xp, wmu, wsig, eo, ei, bmu, bsig, beps)

    if (M, N) != (batch, out_features):
        out = out[:batch, :out_features]
    return out


# ---------------------------------------------------------------------------
# NoisyLinear parameter / noise setup (matches the PyTorch module's init)
# ---------------------------------------------------------------------------

def scale_noise(key, size):
    """Factorized gaussian noise: sign(x) * sqrt(|x|)."""
    x = jax.random.normal(key, (size,), dtype=jnp.float32)
    return jnp.sign(x) * jnp.sqrt(jnp.abs(x))


def init_noisy_linear_params(key, in_features, out_features, std_init=0.5):
    """Deterministic re-implementation of NoisyLinear.__init__ parameter setup."""
    k_wmu, k_bmu, k_eps_in, k_eps_out = jax.random.split(key, 4)
    mu_range = 1.0 / math.sqrt(in_features)

    weight_mu = jax.random.uniform(
        k_wmu, (out_features, in_features), jnp.float32, -mu_range, mu_range)
    weight_sigma = jnp.full((out_features, in_features),
                            std_init / math.sqrt(in_features), jnp.float32)
    bias_mu = jax.random.uniform(
        k_bmu, (out_features,), jnp.float32, -mu_range, mu_range)
    bias_sigma = jnp.full((out_features,),
                          std_init / math.sqrt(out_features), jnp.float32)

    # reset_noise(): factorized gaussian noise.
    eps_in = scale_noise(k_eps_in, in_features)
    eps_out = scale_noise(k_eps_out, out_features)
    bias_epsilon = eps_out                          # per the PyTorch module
    weight_epsilon = jnp.outer(eps_out, eps_in)     # kept only for the reference

    return dict(weight_mu=weight_mu, weight_sigma=weight_sigma,
                bias_mu=bias_mu, bias_sigma=bias_sigma,
                eps_in=eps_in, eps_out=eps_out,
                bias_epsilon=bias_epsilon, weight_epsilon=weight_epsilon)


if __name__ == "__main__":
    key = jax.random.PRNGKey(0)
    k_params, k_x = jax.random.split(key)

    batch, in_features, out_features = 8, 32, 16
    params = init_noisy_linear_params(k_params, in_features, out_features)
    x = jax.random.normal(k_x, (batch, in_features), dtype=jnp.float32)

    out = noisy_linear(x,
                       params["weight_mu"], params["weight_sigma"],
                       params["bias_mu"], params["bias_sigma"],
                       params["bias_epsilon"],
                       params["eps_in"], params["eps_out"])
    out = jax.block_until_ready(out)

    # Reference check in plain JAX (same math as the PyTorch forward).
    w_eff = params["weight_mu"] + params["weight_sigma"] * params["weight_epsilon"]
    b_eff = params["bias_mu"] + params["bias_sigma"] * params["bias_epsilon"]
    ref = x @ w_eff.T + b_eff

    assert out.shape == (batch, out_features)
    assert jnp.allclose(out, ref, atol=1e-5, rtol=1e-5)

    print("KERNEL_OK")
</pallas_src>

<mosaic_0001>
module attributes {stable_mosaic.version = 11 : i64} {
  func.func @_noisy_linear_kernel_fused(%arg0: i32, %arg1: i32, %arg2: memref<8x32xf32, #tpu.memory_space<vmem>>, %arg3: memref<16x32xf32, #tpu.memory_space<vmem>>, %arg4: memref<16x32xf32, #tpu.memory_space<vmem>>, %arg5: memref<16x1xf32, #tpu.memory_space<vmem>>, %arg6: memref<1x32xf32, #tpu.memory_space<vmem>>, %arg7: memref<1x16xf32, #tpu.memory_space<vmem>>, %arg8: memref<1x16xf32, #tpu.memory_space<vmem>>, %arg9: memref<1x16xf32, #tpu.memory_space<vmem>>, %arg10: memref<8x16xf32, #tpu.memory_space<vmem>>) attributes {dimension_semantics = [#tpu.dimension_semantics<parallel>, #tpu.dimension_semantics<parallel>], iteration_bounds = array<i64: 1, 1>, scalar_prefetch = 0 : i64, scratch_operands = 0 : i64, tpu.core_type = #tpu.core_type<tc>, window_params = [{transform_indices = @transform_0, window_bounds = array<i64: 8, 32>}, {transform_indices = @transform_1, window_bounds = array<i64: 16, 32>}, {transform_indices = @transform_2, window_bounds = array<i64: 16, 32>}, {transform_indices = @transform_3, window_bounds = array<i64: 16, 1>}, {pipeline_mode = #tpu.pipeline_mode<synchronous>, transform_indices = @transform_4, window_bounds = array<i64: 1, 32>}, {transform_indices = @transform_5, window_bounds = array<i64: 1, 16>}, {transform_indices = @transform_6, window_bounds = array<i64: 1, 16>}, {transform_indices = @transform_7, window_bounds = array<i64: 1, 16>}, {transform_indices = @transform_8, window_bounds = array<i64: 8, 16>}]} {
    %c0 = arith.constant 0 : index
    %c0_0 = arith.constant 0 : index
    %0 = vector.load %arg3[%c0, %c0_0] : memref<16x32xf32, #tpu.memory_space<vmem>>, vector<16x32xf32>
    %c0_1 = arith.constant 0 : index
    %c0_2 = arith.constant 0 : index
    %1 = vector.load %arg4[%c0_1, %c0_2] : memref<16x32xf32, #tpu.memory_space<vmem>>, vector<16x32xf32>
    %c0_3 = arith.constant 0 : index
    %c0_4 = arith.constant 0 : index
    %2 = vector.load %arg5[%c0_3, %c0_4] : memref<16x1xf32, #tpu.memory_space<vmem>>, vector<16x1xf32>
    %c0_5 = arith.constant 0 : index
    %c0_6 = arith.constant 0 : index
    %3 = vector.load %arg6[%c0_5, %c0_6] : memref<1x32xf32, #tpu.memory_space<vmem>>, vector<1x32xf32>
    %4 = vector.broadcast %2 : vector<16x1xf32> to vector<16x32xf32>
    %5 = vector.broadcast %3 : vector<1x32xf32> to vector<16x32xf32>
    %6 = arith.mulf %4, %5 : vector<16x32xf32>
    %7 = arith.mulf %1, %6 : vector<16x32xf32>
    %8 = arith.addf %0, %7 : vector<16x32xf32>
    %c0_7 = arith.constant 0 : index
    %c0_8 = arith.constant 0 : index
    %9 = vector.load %arg7[%c0_7, %c0_8] : memref<1x16xf32, #tpu.memory_space<vmem>>, vector<1x16xf32>
    %c0_9 = arith.constant 0 : index
    %c0_10 = arith.constant 0 : index
    %10 = vector.load %arg8[%c0_9, %c0_10] : memref<1x16xf32, #tpu.memory_space<vmem>>, vector<1x16xf32>
    %c0_11 = arith.constant 0 : index
    %c0_12 = arith.constant 0 : index
    %11 = vector.load %arg9[%c0_11, %c0_12] : memref<1x16xf32, #tpu.memory_space<vmem>>, vector<1x16xf32>
    %12 = arith.mulf %10, %11 : vector<1x16xf32>
    %13 = arith.addf %9, %12 : vector<1x16xf32>
    %c0_13 = arith.constant 0 : index
    %c0_14 = arith.constant 0 : index
    %14 = vector.load %arg2[%c0_13, %c0_14] : memref<8x32xf32, #tpu.memory_space<vmem>>, vector<8x32xf32>
    %cst = arith.constant dense<0.000000e+00> : vector<8x16xf32>
    %15 = tpu.matmul %14, %8, %cst {dimension_numbers = #tpu.dot_dimension_numbers<[1], [1], [0], [0], [0, 0, 1, 0], [], []>} : vector<8x32xf32>, vector<16x32xf32>, vector<8x16xf32> -> vector<8x16xf32>
    %16 = vector.broadcast %13 : vector<1x16xf32> to vector<8x16xf32>
    %17 = arith.addf %15, %16 : vector<8x16xf32>
    %c0_15 = arith.constant 0 : index
    %c0_16 = arith.constant 0 : index
    %18 = vector.load %arg10[%c0_15, %c0_16] : memref<8x16xf32, #tpu.memory_space<vmem>>, vector<8x16xf32>
    tpu.vector_store %arg10[%c0_15, %c0_16], %17 {strides = array<i32>} : memref<8x16xf32, #tpu.memory_space<vmem>>, vector<8x16xf32>,
    return
  }
  func.func @transform_0(%arg0: i32, %arg1: i32) -> (i32, i32) {
    %c0_i32 = arith.constant 0 : i32
    %c0_i32_0 = arith.constant 0 : i32
    return %arg0, %c0_i32 : i32, i32
  }
  func.func @transform_1(%arg0: i32, %arg1: i32) -> (i32, i32) {
    %c0_i32 = arith.constant 0 : i32
    %c0_i32_0 = arith.constant 0 : i32
    return %arg1, %c0_i32 : i32, i32
  }
  func.func @transform_2(%arg0: i32, %arg1: i32) -> (i32, i32) {
    %c0_i32 = arith.constant 0 : i32
    %c0_i32_0 = arith.constant 0 : i32
    return %arg1, %c0_i32 : i32, i32
  }
  func.func @transform_3(%arg0: i32, %arg1: i32) -> (i32, i32) {
    %c0_i32 = arith.constant 0 : i32
    %c0_i32_0 = arith.constant 0 : i32
    return %arg1, %c0_i32 : i32, i32
  }
  func.func @transform_4(%arg0: i32, %arg1: i32) -> (i32, i32) {
    %c0_i32 = arith.constant 0 : i32
    %c0_i32_0 = arith.constant 0 : i32
    %c0_i32_1 = arith.constant 0 : i32
    return %c0_i32, %c0_i32_0 : i32, i32
  }
  func.func @transform_5(%arg0: i32, %arg1: i32) -> (i32, i32) {
    %c0_i32 = arith.constant 0 : i32
    %c0_i32_0 = arith.constant 0 : i32
    return %c0_i32, %arg1 : i32, i32
  }
  func.func @transform_6(%arg0: i32, %arg1: i32) -> (i32, i32) {
    %c0_i32 = arith.constant 0 : i32
    %c0_i32_0 = arith.constant 0 : i32
    return %c0_i32, %arg1 : i32, i32
  }
  func.func @transform_7(%arg0: i32, %arg1: i32) -> (i32, i32) {
    %c0_i32 = arith.constant 0 : i32
    %c0_i32_0 = arith.constant 0 : i32
    return %c0_i32, %arg1 : i32, i32
  }
  func.func @transform_8(%arg0: i32, %arg1: i32) -> (i32, i32) {
    %c0_i32 = arith.constant 0 : i32
    return %arg0, %arg1 : i32, i32
  }
}

</mosaic_0001>

<bundles_post_ra>
// kernel: tpu_custom_call.1
= control target key start
LH: loop header
LB: loop body
LE: loop exit
PB: predicated region body
PF: predicated region fallthrough
CT: control target
= control target key end

     0   :  { %13 = vsyncpa [#allocation3], 0  ;;  %s370_s0 = inlined_call_operand.hbm [shape: f32[8,32], index: 0, kind: input, shape index: {}]   ;;  %s371_s1 = inlined_call_operand.vmem [shape: f32[16,32], index: 1, kind: input, shape index: {}]   ;;  %s372_s2 = inlined_call_operand.hbm [shape: f32[16,32], index: 2, kind: input, shape index: {}]   ;;  %s373_s3 = inlined_call_operand.vmem [shape: f32[16,1], index: 3, kind: input, shape index: {}]   ;;  %s374_s4 = inlined_call_operand.vmem [shape: f32[1,32], index: 4, kind: input, shape index: {}]   ;;  %s375_s5 = inlined_call_operand.vmem [shape: f32[1,16], index: 5, kind: input, shape index: {}]   ;;  %s376_s6 = inlined_call_operand.vmem [shape: f32[1,16], index: 6, kind: input, shape index: {}]   ;;  %s377_s7 = inlined_call_operand.vmem [shape: f32[1,16], index: 7, kind: input, shape index: {}]   ;;  %s378_s8 = inlined_call_operand.hbm [shape: f32[8,16], index: 8, kind: output, shape index: {}]  }
   0x1   :  { %14 = vsyncpa [#allocation6], 0 }
   0x2   :  { %15 = vsyncpa [#allocation4], 0  ;;  %s284_s27 = smov [#allocation2]   ;;  %s285_s29 = smov [#allocation5]  }
   0x3   :  { %s22_s28 = sshll.u32 %s284_s27, 4  ;;  %s33_s30 = sshll.u32 %s285_s29, 4  ;;  %s23_s28 = int_to_ptr.vmem [resolvable:$true] %s22_s28  ;;  %s34_s30 = int_to_ptr.vmem [resolvable:$true] %s33_s30 }
   0x4   :  { %s226_s9 = scalar_lea.vmem %s23_s28, 128  ;;  %p231_p1 = scmp.lt.s32.totalorder %s23_s28, %s23_s28 }
   0x5   :  { %p227_p0 = scmp.ne.s32.totalorder %s23_s28, %s226_s9  ;;  %p232_p2 = scmp.lt.s32.totalorder %s226_s9, %s226_s9 }
   0x7   :  { %p233_p3 = por %p232_p2, %p231_p1 }
   0x9   :  { %p234_p4 = pnand %p233_p3, %p227_p0 }
   0xb   :  { %237 = shalt.err (!%p234_p4)
}
   0xc   :  { %25 = dma.hbm_to_vmem [thread:$0]  %s370_s0, 128, %s23_s28, [#allocation3]  }
   0xd   :  { %s246_s12 = scalar_lea.vmem %s34_s30, 256  ;;  %p251_p6 = scmp.lt.s32.totalorder %s34_s30, %s34_s30 }
   0xe   :  { %p247_p5 = scmp.ne.s32.totalorder %s34_s30, %s246_s12  ;;  %p252_p7 = scmp.lt.s32.totalorder %s246_s12, %s246_s12 }
  0x10   :  { %p253_p8 = por %p252_p7, %p251_p6 }
  0x12   :  { %p254_p9 = pnand %p253_p8, %p247_p5 }
  0x14   :  { %257 = shalt.err (!%p254_p9)
}
  0x15   :  { %s286_s13 = smov 128   ;;  %s287_s14 = smov 8  }
  0x16   :  { %39 = dma.hbm_to_vmem [thread:$0]  %s372_s2, 256, %s34_s30, [#allocation6], %s286_s13, %s286_s13, %s287_s14  }
  0x17   :  { %278 = dma.done.wait [#allocation3], 128  }
  0x18   :  { %279 = vsyncadd [#allocation3], 4294967168 }
  0x19   :  { %280 = dma.done.wait [#allocation6], 256  }
  0x1a   :  { %281 = vsyncadd [#allocation6], 4294967040  ;;  %v288_v0 = vmov 0   ;;  %v61_v1 = vld [vmem:[%s373_s3 + $0x8] sm:$0xff]  ;;  %v60_v2 = vld [vmem:[%s373_s3] sm:$0xff]  ;;  %v289_v3 = vmov 0.0   ;;  %v92_v18 = vlaneseq }
  0x1b   :  { %217 = vset.pattern.permute.xlu0 %v288_v0  ;;  %202 = vmatprep.subr.mxu0 %v289_v3  ;;  %vm290_vm0 = vmmov 0   ;;  %v195_v4 = vld [vmem:[%s374_s4] ss:$0 sm:$0xff]  ;;  %v59_v6 = vld [vmem:[#allocation5 + $0x8] sm:$0xff]  ;;  %v57_v8 = vld [vmem:[%s371_s1 + $0x8] sm:$0xff]  ;;  %vm97_vm1 = vcmask 261120  }
  0x1c   :  { %70 = vperm.xlu0 %217, %v61_v1   ;;  %206 = vmatprep.mubr.msk.f32.mxu0 %vm290_vm0, %v289_v3  ;;  %v58_v11 = vld [vmem:[#allocation5] sm:$0xff]  ;;  %v56_v14 = vld [vmem:[%s371_s1] sm:$0xff]  ;;  %v93_v22 = vshrl.u32 %v92_v18, 7  ;;  %s291_s28 = smov [#allocation7]   ;;  %vm177_vm2 = vcmask 130048  }
  0x1d   :  { %v90_v17 = vld [vmem:[#allocation2] sm:$0xff]  ;;  %s185_s29 = sshll.u32 %s291_s28, 4  ;;  %s186_s29 = int_to_ptr.vmem [resolvable:$true] %s185_s29 }
  0x1e   :  { %v86_v19 = vld [vmem:[%s376_s6] sm:$0x1]  ;;  %v94_v25 = vsub.s32 0, %v93_v22  ;;  %s258_s6 = scalar_lea.vmem %s186_s29, 128  ;;  %p263_p11 = scmp.lt.s32.totalorder %s186_s29, %s186_s29 }
  0x1f   :  { %v87_v20 = vld [vmem:[%s377_s7] sm:$0x1]  ;;  %p259_p10 = scmp.ne.s32.totalorder %s186_s29, %s258_s6  ;;  %p264_p12 = scmp.lt.s32.totalorder %s258_s6, %s258_s6 }
  0x20   :  { %65 = vperm.xlu0 %217, %v60_v2   ;;  %v88_v21 = vmul.f32 %v87_v20, %v86_v19  ;;  %v85_v23 = vld [vmem:[%s375_s5] sm:$0x1] }
  0x21   :  { %p265_p13 = por %p264_p12, %p263_p11 }
  0x22   :  { %v89_v24 = vadd.f32 %v88_v21, %v85_v23 }
  0x23   :  { %p266_p0 = pnand %p265_p13, %p259_p10 }
  0x24   :  { %v95_v26 = vrot.slane %v89_v24, %v94_v25 }
  0x97   :  { %v71_v5 = vpop.permute.xlu0 %70 }
  0x98   :  { %v80_v7 = vmul.f32 %v195_v4, %v71_v5 }
  0x9a   :  { %v82_v9 = vmul.f32 %v80_v7, %v59_v6 }
  0x9b   :  { %v66_v10 = vpop.permute.xlu0 %65 }
  0x9c   :  { %v79_v12 = vmul.f32 %v195_v4, %v66_v10  ;;  %v84_v13 = vadd.f32 %v82_v9, %v57_v8 }
  0x9e   :  { %v81_v15 = vmul.f32 %v79_v12, %v58_v11  ;;  %203 = vmatpush3.xpose.msk.msra.mxu0 %vm97_vm1, %v84_v13 }
  0x9f   :  { %204 = vmatprep.subr.mxu0 %v289_v3 }
  0xa0   :  { %v83_v16 = vadd.f32 %v81_v15, %v56_v14 }
  0xa2   :  { %205 = vmatpush3.xpose.msk.msra.mxu0 %vm97_vm1, %v83_v16 }
  0xa5   :  { %207 = vmatmul.mubr.msk.f32.vlgmr.msra.gmra.mxu0 %vm97_vm1, %v90_v17 }
 0x165   :  { %v173_v27 = vpop.f32.mrf.mxu0 }
 0x166   :  { %v174_v28 = vadd.f32 %v173_v27, %v95_v26 }
 0x167   :  { %v208_v29 = vpop.f32.mrf.mxu0 }
 0x168   :  { %178 = vst.msk [vmem:[#allocation7] sm:$0xff] %vm177_vm2, %v174_v28 }
 0x169   :  { %269 = shalt.err (!%p266_p0)
}
 0x16a   :  { %188 = dma.vmem_to_hbm [thread:$0]  %s186_s29, 128, %s378_s8, [#allocation4]  }
 0x16b   :  { %282 = dma.done.wait [#allocation4], 128  }
 0x16c   :  { %283 = vsyncadd [#allocation4], 4294967168 }
 0x16d   :  { %192 = vsyncpa [#allocation3], 1 }
 0x16e   :  { %193 = vsyncpa [#allocation6], 1 }
 0x16f   :  { %194 = vsyncpa [#allocation4], 1 }

</bundles_post_ra>
